<compile_context>
chip_gen: v7x
topology: tpu7x:2x2x1
jax: 0.10.0
libtpu: 0.0.40
codegen_flags: <defaults>
</compile_context>

<pallas_src>
import jax
import jax.numpy as jnp
from jax import lax
from jax.experimental import pallas as pl
from jax.experimental.pallas import tpu as pltpu


def utterance_kernel(x_ref, xlen_ref, w1_ref, b1_ref, w2_ref, b2_ref, o_ref, acc_ref):
    # x_ref:    VMEM (Bb, Tt, D)   -- one time tile of the input
    # xlen_ref: VMEM (Bb, 1) int32
    # w1_ref:   VMEM (D, H), b1_ref: (1, H)
    # w2_ref:   VMEM (H, O), b2_ref: (1, O)
    # o_ref:    VMEM (Bb, O)
    # acc_ref:  VMEM (Bb, D) f32 scratch -- running masked sum over time
    t = pl.program_id(1)
    nt = pl.num_programs(1)
    Bb, Tt, _ = x_ref.shape

    @pl.when(t == 0)
    def _init():
        acc_ref[...] = jnp.zeros_like(acc_ref)

    x = x_ref[...].astype(jnp.float32)            # supports bf16 x, f32 accumulate
    lengths = xlen_ref[...]                       # (Bb, 1) int32

    # Length mask for this time tile.
    t_idx = t * Tt + lax.broadcasted_iota(jnp.int32, (Bb, Tt), 1)   # (Bb, Tt)
    mask = (t_idx < lengths).astype(jnp.float32)                    # (Bb, Tt)

    # Masked partial sum over this time tile.
    # TODO(synk): for very long T / wide D this VPU mul+reduce could move onto the
    # idle MXU via a batched dot_general(mask, x); second-order while HBM-bound.
    acc_ref[...] += jnp.sum(x * mask[:, :, None], axis=1)           # (Bb, D)

    @pl.when(t == nt - 1)
    def _finalize():
        lengths_f = lengths.astype(jnp.float32)
        pooled = acc_ref[...] / jnp.maximum(lengths_f, 1.0)         # exact mean
        # For x_len == 0 the reference pools h over an empty mask -> 0, so the
        # hidden bias must not leak through: gate b1 with (x_len > 0).
        nonempty = (lengths > 0).astype(jnp.float32)                # (Bb, 1)
        h = jnp.dot(pooled, w1_ref[...],
                    preferred_element_type=jnp.float32) + b1_ref[...] * nonempty
        y = jnp.dot(h, w2_ref[...],
                    preferred_element_type=jnp.float32) + b2_ref[...]
        o_ref[...] = y.astype(o_ref.dtype)


def _pick_block(total, target, quantum=8):
    """Largest divisor of `total` that is <= target and a multiple of `quantum`
    (falls back to the full axis, which always satisfies the tiling rule)."""
    if total <= target or total <= quantum:
        return total
    cand = (min(target, total) // quantum) * quantum
    while cand >= quantum:
        if total % cand == 0:
            return cand
        cand -= quantum
    return total


def utterance_level(x, x_len, w1, b1, w2, b2, *, block_b=None, block_t=None,
                    activation_type=None):
    """x: (B, T, D) f32/bf16; x_len: (B,) int; weights pre-transposed as (in, out)."""
    # Guard: the pool-before-linear rewrite is only valid with no activation.
    assert activation_type is None, (
        "utterance_level kernel only implements activation_type=None")

    B, T, D = x.shape
    H = w1.shape[1]
    O = w2.shape[1]

    # ---- batch tiling: partial blocks must be multiples of 8 (sublane rule on
    # the (block_b, 1) / (block_b, O) specs); >=2 blocks feeds both v7x cores.
    if block_b is None:
        block_b = 8 if (B % 8 == 0 and B >= 16) else B
    assert B % block_b == 0, "batch must be divisible by block_b"
    assert block_b == B or block_b % 8 == 0, "partial batch blocks must be multiples of 8"

    # ---- time tiling: stream x along T so VMEM stays bounded for any sequence
    # length; target ~1 MiB per x tile (double-buffered ~2 MiB).
    if block_t is None:
        bytes_per_row = block_b * D * x.dtype.itemsize
        target_t = max(8, (1 << 20) // max(bytes_per_row, 1))
        block_t = _pick_block(T, target_t, quantum=8)
    assert T % block_t == 0, "seq len must be divisible by block_t"
    assert block_t == T or block_t % 8 == 0, "partial time blocks must be multiples of 8"

    grid = (B // block_b, T // block_t)          # reduction (T) axis last

    xlen2d = x_len.astype(jnp.int32).reshape(B, 1)

    flops = 2 * B * T * D + 2 * B * D * H + 2 * B * H * O
    bytes_accessed = (B * T * D * x.dtype.itemsize + B * 4
                      + (D * H + H + H * O + O) * 4 + B * O * 4)

    return pl.pallas_call(
        utterance_kernel,
        out_shape=jax.ShapeDtypeStruct((B, O), jnp.float32),
        grid_spec=pltpu.PrefetchScalarGridSpec(
            num_scalar_prefetch=0,
            grid=grid,
            in_specs=[
                pl.BlockSpec((block_b, block_t, D), lambda b, t: (b, t, 0)),  # x
                pl.BlockSpec((block_b, 1), lambda b, t: (b, 0)),              # x_len
                pl.BlockSpec((D, H), lambda b, t: (0, 0)),                    # W1
                pl.BlockSpec((1, H), lambda b, t: (0, 0)),                    # b1
                pl.BlockSpec((H, O), lambda b, t: (0, 0)),                    # W2
                pl.BlockSpec((1, O), lambda b, t: (0, 0)),                    # b2
            ],
            out_specs=pl.BlockSpec((block_b, O), lambda b, t: (b, 0)),
            scratch_shapes=[pltpu.VMEM((block_b, D), jnp.float32)],
        ),
        compiler_params=pltpu.CompilerParams(
            dimension_semantics=("parallel", "arbitrary"),
            vmem_limit_bytes=32 * 1024 * 1024,
        ),
        cost_estimate=pl.CostEstimate(flops=flops, transcendentals=0,
                                      bytes_accessed=bytes_accessed),
    )(x, xlen2d, w1, b1, w2, b2)


def reference(x, x_len, w1, b1, w2, b2):
    h = jnp.einsum("btd,dh->bth", x.astype(jnp.float32), w1) + b1      # (B, T, H)
    T = x.shape[1]
    mask = (jnp.arange(T)[None, :] < x_len[:, None]).astype(jnp.float32)
    denom = jnp.maximum(x_len, 1)[:, None].astype(jnp.float32)
    pooled = jnp.sum(h * mask[:, :, None], axis=1) / denom
    return pooled @ w2 + b2


if __name__ == "__main__":
    # batch, seq_len, input_size, hidden_sizes[0], output_size
    B, T, D, H, O = 8, 64, 32, 256, 8

    key = jax.random.PRNGKey(0)
    kx, k1, k2, k3, k4 = jax.random.split(key, 5)

    x = jax.random.normal(kx, (B, T, D), dtype=jnp.float32)
    # varied lengths, including an empty utterance to exercise the x_len == 0 path
    x_len = jnp.array([64, 37, 0, 8, 64, 1, 50, 23], dtype=jnp.int32)

    # Parameters stored pre-transposed as (in, out); match nn.Linear(D,H)/(H,O).
    w1 = jax.random.normal(k1, (D, H), dtype=jnp.float32) * 0.05
    b1 = jax.random.normal(k2, (1, H), dtype=jnp.float32) * 0.05
    w2 = jax.random.normal(k3, (H, O), dtype=jnp.float32) * 0.05
    b2 = jax.random.normal(k4, (1, O), dtype=jnp.float32) * 0.05

    # block_t=16 -> grid = (1, 4): exercises the streamed-T accumulator path and
    # double-buffered x DMA even at these small demo shapes.
    y = utterance_level(x, x_len, w1, b1, w2, b2, block_t=16)
    y = jax.block_until_ready(y)

    y_ref = reference(x, x_len, w1, b1[0], w2, b2[0])
    assert y.shape == (B, O)
    assert jnp.allclose(y, y_ref, atol=1e-3, rtol=1e-3), (y, y_ref)

    print("KERNEL_OK")
</pallas_src>

<mosaic_0001>
module attributes {stable_mosaic.version = 11 : i64} {
  func.func @utterance_kernel(%arg0: i32, %arg1: i32, %arg2: memref<8x16x32xf32, #tpu.memory_space<vmem>>, %arg3: memref<8x1xi32, #tpu.memory_space<vmem>>, %arg4: memref<32x256xf32, #tpu.memory_space<vmem>>, %arg5: memref<1x256xf32, #tpu.memory_space<vmem>>, %arg6: memref<256x8xf32, #tpu.memory_space<vmem>>, %arg7: memref<1x8xf32, #tpu.memory_space<vmem>>, %arg8: memref<8x8xf32, #tpu.memory_space<vmem>>, %arg9: memref<8x32xf32, #tpu.memory_space<vmem>>) attributes {dimension_semantics = [#tpu.dimension_semantics<parallel>, #tpu.dimension_semantics<arbitrary>], iteration_bounds = array<i64: 1, 4>, scalar_prefetch = 0 : i64, scratch_operands = 1 : i64, tpu.core_type = #tpu.core_type<tc>, window_params = [{transform_indices = @transform_0, window_bounds = array<i64: 8, 16, 32>}, {transform_indices = @transform_1, window_bounds = array<i64: 8, 1>}, {pipeline_mode = #tpu.pipeline_mode<synchronous>, transform_indices = @transform_2, window_bounds = array<i64: 32, 256>}, {pipeline_mode = #tpu.pipeline_mode<synchronous>, transform_indices = @transform_3, window_bounds = array<i64: 1, 256>}, {pipeline_mode = #tpu.pipeline_mode<synchronous>, transform_indices = @transform_4, window_bounds = array<i64: 256, 8>}, {pipeline_mode = #tpu.pipeline_mode<synchronous>, transform_indices = @transform_5, window_bounds = array<i64: 1, 8>}, {transform_indices = @transform_6, window_bounds = array<i64: 8, 8>}]} {
    %c0_i32 = arith.constant 0 : i32
    %0 = arith.cmpi eq, %arg1, %c0_i32 : i32
    %1 = arith.extui %0 : i1 to i32
    %c0_i32_0 = arith.constant 0 : i32
    %2 = arith.cmpi ne, %1, %c0_i32_0 : i32
    scf.if %2 {
      %cst_10 = arith.constant 0.000000e+00 : f32
      %23 = vector.broadcast %cst_10 : f32 to vector<8x32xf32>
      %c0_11 = arith.constant 0 : index
      %c0_12 = arith.constant 0 : index
      %24 = vector.load %arg9[%c0_11, %c0_12] : memref<8x32xf32, #tpu.memory_space<vmem>>, vector<8x32xf32>
      tpu.vector_store %arg9[%c0_11, %c0_12], %23 {strides = array<i32>} : memref<8x32xf32, #tpu.memory_space<vmem>>, vector<8x32xf32>,
    } else {
    }
    %c0 = arith.constant 0 : index
    %c0_1 = arith.constant 0 : index
    %c0_2 = arith.constant 0 : index
    %3 = vector.load %arg2[%c0, %c0_1, %c0_2] : memref<8x16x32xf32, #tpu.memory_space<vmem>>, vector<8x16x32xf32>
    %c0_3 = arith.constant 0 : index
    %c0_4 = arith.constant 0 : index
    %4 = vector.load %arg3[%c0_3, %c0_4] : memref<8x1xi32, #tpu.memory_space<vmem>>, vector<8x1xi32>
    %c16_i32 = arith.constant 16 : i32
    %5 = arith.muli %arg1, %c16_i32 : i32
    %6 = tpu.iota {dimensions = array<i32: 1>} : vector<8x16xi32>
    %7 = vector.broadcast %5 : i32 to vector<8x16xi32>
    %8 = arith.addi %7, %6 : vector<8x16xi32>
    %9 = vector.broadcast %4 : vector<8x1xi32> to vector<8x16xi32>
    %10 = arith.cmpi slt, %8, %9 : vector<8x16xi32>
    %11 = arith.extui %10 : vector<8x16xi1> to vector<8x16xi32>
    %12 = arith.sitofp %11 : vector<8x16xi32> to vector<8x16xf32>
    %c0_5 = arith.constant 0 : index
    %c0_6 = arith.constant 0 : index
    %13 = vector.load %arg9[%c0_5, %c0_6] : memref<8x32xf32, #tpu.memory_space<vmem>>, vector<8x32xf32>
    %14 = vector.shape_cast %12 : vector<8x16xf32> to vector<8x16x1xf32>
    %15 = vector.broadcast %14 : vector<8x16x1xf32> to vector<8x16x32xf32>
    %16 = arith.mulf %3, %15 : vector<8x16x32xf32>
    %cst = arith.constant dense<0.000000e+00> : vector<8x32xf32>
    %17 = vector.multi_reduction <add>, %16, %cst [1] : vector<8x16x32xf32> to vector<8x32xf32>
    %18 = arith.addf %13, %17 : vector<8x32xf32>
    %c0_7 = arith.constant 0 : index
    %c0_8 = arith.constant 0 : index
    %19 = vector.load %arg9[%c0_7, %c0_8] : memref<8x32xf32, #tpu.memory_space<vmem>>, vector<8x32xf32>
    tpu.vector_store %arg9[%c0_7, %c0_8], %18 {strides = array<i32>} : memref<8x32xf32, #tpu.memory_space<vmem>>, vector<8x32xf32>,
    %c3_i32 = arith.constant 3 : i32
    %20 = arith.cmpi eq, %arg1, %c3_i32 : i32
    %21 = arith.extui %20 : i1 to i32
    %c0_i32_9 = arith.constant 0 : i32
    %22 = arith.cmpi ne, %21, %c0_i32_9 : i32
    scf.if %22 {
      %23 = arith.sitofp %4 : vector<8x1xi32> to vector<8x1xf32>
      %c0_10 = arith.constant 0 : index
      %c0_11 = arith.constant 0 : index
      %24 = vector.load %arg9[%c0_10, %c0_11] : memref<8x32xf32, #tpu.memory_space<vmem>>, vector<8x32xf32>
      %cst_12 = arith.constant 1.000000e+00 : f32
      %25 = vector.broadcast %cst_12 : f32 to vector<8x1xf32>
      %26 = arith.maximumf %23, %25 : vector<8x1xf32>
      %27 = vector.broadcast %26 : vector<8x1xf32> to vector<8x32xf32>
      %28 = arith.divf %24, %27 : vector<8x32xf32>
      %c0_i32_13 = arith.constant 0 : i32
      %29 = vector.broadcast %c0_i32_13 : i32 to vector<8x1xi32>
      %30 = arith.cmpi sgt, %4, %29 : vector<8x1xi32>
      %31 = arith.extui %30 : vector<8x1xi1> to vector<8x1xi32>
      %32 = arith.sitofp %31 : vector<8x1xi32> to vector<8x1xf32>
      %c0_14 = arith.constant 0 : index
      %c0_15 = arith.constant 0 : index
      %33 = vector.load %arg4[%c0_14, %c0_15] : memref<32x256xf32, #tpu.memory_space<vmem>>, vector<32x256xf32>
      %cst_16 = arith.constant dense<0.000000e+00> : vector<8x256xf32>
      %34 = tpu.matmul %28, %33, %cst_16 {dimension_numbers = #tpu.dot_dimension_numbers<[1], [0], [0], [1], [0, 0, 1, 1], [], []>} : vector<8x32xf32>, vector<32x256xf32>, vector<8x256xf32> -> vector<8x256xf32>
      %c0_17 = arith.constant 0 : index
      %c0_18 = arith.constant 0 : index
      %35 = vector.load %arg5[%c0_17, %c0_18] : memref<1x256xf32, #tpu.memory_space<vmem>>, vector<1x256xf32>
      %36 = vector.broadcast %35 : vector<1x256xf32> to vector<8x256xf32>
      %37 = vector.broadcast %32 : vector<8x1xf32> to vector<8x256xf32>
      %38 = arith.mulf %36, %37 : vector<8x256xf32>
      %39 = arith.addf %34, %38 : vector<8x256xf32>
      %c0_19 = arith.constant 0 : index
      %c0_20 = arith.constant 0 : index
      %40 = vector.load %arg6[%c0_19, %c0_20] : memref<256x8xf32, #tpu.memory_space<vmem>>, vector<256x8xf32>
      %cst_21 = arith.constant dense<0.000000e+00> : vector<8x8xf32>
      %41 = tpu.matmul %39, %40, %cst_21 {dimension_numbers = #tpu.dot_dimension_numbers<[1], [0], [0], [1], [0, 0, 1, 1], [], []>} : vector<8x256xf32>, vector<256x8xf32>, vector<8x8xf32> -> vector<8x8xf32>
      %c0_22 = arith.constant 0 : index
      %c0_23 = arith.constant 0 : index
      %42 = vector.load %arg7[%c0_22, %c0_23] : memref<1x8xf32, #tpu.memory_space<vmem>>, vector<1x8xf32>
      %43 = vector.broadcast %42 : vector<1x8xf32> to vector<8x8xf32>
      %44 = arith.addf %41, %43 : vector<8x8xf32>
      %c0_24 = arith.constant 0 : index
      %c0_25 = arith.constant 0 : index
      %45 = vector.load %arg8[%c0_24, %c0_25] : memref<8x8xf32, #tpu.memory_space<vmem>>, vector<8x8xf32>
      tpu.vector_store %arg8[%c0_24, %c0_25], %44 {strides = array<i32>} : memref<8x8xf32, #tpu.memory_space<vmem>>, vector<8x8xf32>,
    } else {
    }
    return
  }
  func.func @transform_0(%arg0: i32, %arg1: i32) -> (i32, i32, i32) {
    %c0_i32 = arith.constant 0 : i32
    %c0_i32_0 = arith.constant 0 : i32
    return %arg0, %arg1, %c0_i32 : i32, i32, i32
  }
  func.func @transform_1(%arg0: i32, %arg1: i32) -> (i32, i32) {
    %c0_i32 = arith.constant 0 : i32
    %c0_i32_0 = arith.constant 0 : i32
    return %arg0, %c0_i32 : i32, i32
  }
  func.func @transform_2(%arg0: i32, %arg1: i32) -> (i32, i32) {
    %c0_i32 = arith.constant 0 : i32
    %c0_i32_0 = arith.constant 0 : i32
    %c0_i32_1 = arith.constant 0 : i32
    return %c0_i32, %c0_i32_0 : i32, i32
  }
  func.func @transform_3(%arg0: i32, %arg1: i32) -> (i32, i32) {
    %c0_i32 = arith.constant 0 : i32
    %c0_i32_0 = arith.constant 0 : i32
    %c0_i32_1 = arith.constant 0 : i32
    return %c0_i32, %c0_i32_0 : i32, i32
  }
  func.func @transform_4(%arg0: i32, %arg1: i32) -> (i32, i32) {
    %c0_i32 = arith.constant 0 : i32
    %c0_i32_0 = arith.constant 0 : i32
    %c0_i32_1 = arith.constant 0 : i32
    return %c0_i32, %c0_i32_0 : i32, i32
  }
  func.func @transform_5(%arg0: i32, %arg1: i32) -> (i32, i32) {
    %c0_i32 = arith.constant 0 : i32
    %c0_i32_0 = arith.constant 0 : i32
    %c0_i32_1 = arith.constant 0 : i32
    return %c0_i32, %c0_i32_0 : i32, i32
  }
  func.func @transform_6(%arg0: i32, %arg1: i32) -> (i32, i32) {
    %c0_i32 = arith.constant 0 : i32
    %c0_i32_0 = arith.constant 0 : i32
    return %arg0, %c0_i32 : i32, i32
  }
}

</mosaic_0001>

<bundles_post_ra>
// kernel: tpu_custom_call.1
= control target key start
LH: loop header
LB: loop body
LE: loop exit
PB: predicated region body
PF: predicated region fallthrough
CT: control target
= control target key end

     0   :  { %11 = vsyncpa [#allocation5], 0  ;;  %s1186_s21 = smov 0   ;;  %s1188_s22 = smov 0   ;;  %s1485_s0 = inlined_call_operand.vmem [shape: f32[8,64,32], index: 0, kind: input, shape index: {}]   ;;  %s1486_s1 = inlined_call_operand.vmem [shape: s32[8,1], index: 1, kind: input, shape index: {}]   ;;  %s1487_s2 = inlined_call_operand.vmem [shape: f32[32,256], index: 2, kind: input, shape index: {}]   ;;  %s1488_s3 = inlined_call_operand.vmem [shape: f32[1,256], index: 3, kind: input, shape index: {}]   ;;  %s1489_s4 = inlined_call_operand.vmem [shape: f32[256,8], index: 4, kind: input, shape index: {}]   ;;  %s1490_s5 = inlined_call_operand.vmem [shape: f32[1,8], index: 5, kind: input, shape index: {}]   ;;  %s1491_s6 = inlined_call_operand.hbm [shape: f32[8,8], index: 6, kind: output, shape index: {}]  }
   0x1   :  { %s1190_s23 = smov 0   ;;  %s1192_s24 = smov 0  }
   0x2   :  { %s1194_s25 = smov 0  }
   0x3 LB: > { %s923_s26 = sadd.s32 4294967295, %s1143_s25   ;;  %s26_s27 = sadd.s32 1, %s1139_s24  ;;  %s1143_s25 = sphi %s1194_s25, %s17_s25   ;;  %s1139_s24 = sphi %s1192_s24, %s1496_s24   ;;  %s1135_s23 = sphi %s1190_s23, %s1495_s23   ;;  %s1131_s22 = sphi %s1188_s22, %s1494_s22   ;;  %s1127_s21 = sphi %s1186_s21, %s1493_s21  }
   0x4   : > { %p27_p0 = scmp.ge.s32.totalorder %s26_s27, 4  ;;  %p45_p1 = scmp.ne.s32.totalorder %s1131_s22, %s1127_s21 }
   0x5   : > { %p46_p2 = scmp.eq.s32.totalorder %s1143_s25, 0  ;;  %s38_s29 = sadd.s32 1, %s1131_s22 }
   0x6   : > { %s1498_s27 = smov (%p27_p0, %s26_s27), 0  ;;  %p926_p5 = scmp.ge.s32.totalorder %s1143_s25, 4 }
   0x7   : > { %p47_p3 = por %p46_p2, %p45_p1  ;;  %s34_s28 = ssub.s32 %s1139_s24, %s1498_s27 }
   0x8   : > { %p36_p4 = scmp.eq.s32.totalorder %s34_s28, 0  ;;  %226 = sbr.rel (%p926_p5) target bundleno = 27 (0x1b), region = 36 }
   0xa   : > { %s1222_s30 = scalar_select %p36_p4, %s1131_s22, %s38_s29  }
   0xf   : > { %229 = sbr.rel (!%p47_p3) target bundleno = 27 (0x1b), region = 40  ;;  %s231_s7 = sand.u32 (%p47_p3), 1, %s1131_s22  }
  0x10   : > { %s943_s8 = sshll.u32 (%p47_p3), %s1139_s24, 4  ;;  %s927_s9 = sshll.u32 (%p47_p3), %s231_s7, 7 }
  0x11   : > { %s1230_s12 = scalar_lea.vmem (%p47_p3), %s1485_s0, %s943_s8  ;;  %s233_s13 = scalar_lea.vmem (%p47_p3), [#allocation3], %s927_s9 }
  0x12   : > { %v297_v0 = vld [vmem:[%s1230_s12] sm:$0xff] (%p47_p3)  ;;  %v299_v1 = vld [vmem:[%s1230_s12 + $0x8] sm:$0xff] (%p47_p3) }
  0x13   : > { %v301_v2 = vld [vmem:[%s1230_s12 + $0x40] sm:$0xff] (%p47_p3)  ;;  %298 = vst [vmem:[%s233_s13] sm:$0xff] (%p47_p3), %v297_v0  ;;  %300 = vst [vmem:[%s233_s13 + $0x8] sm:$0xff] (%p47_p3), %v299_v1  ;;  %v303_v3 = vld [vmem:[%s1230_s12 + $0x48] sm:$0xff] (%p47_p3) }
  0x14   : > { %302 = vst [vmem:[%s233_s13 + $0x10] sm:$0xff] (%p47_p3), %v301_v2  ;;  %v305_v4 = vld [vmem:[%s1230_s12 + $0x80] sm:$0xff] (%p47_p3)  ;;  %v307_v5 = vld [vmem:[%s1230_s12 + $0x88] sm:$0xff] (%p47_p3)  ;;  %304 = vst [vmem:[%s233_s13 + $0x18] sm:$0xff] (%p47_p3), %v303_v3 }
  0x15   : > { %306 = vst [vmem:[%s233_s13 + $0x20] sm:$0xff] (%p47_p3), %v305_v4  ;;  %308 = vst [vmem:[%s233_s13 + $0x28] sm:$0xff] (%p47_p3), %v307_v5  ;;  %v309_v6 = vld [vmem:[%s1230_s12 + $0xc0] sm:$0xff] (%p47_p3)  ;;  %v311_v7 = vld [vmem:[%s1230_s12 + $0xc8] sm:$0xff] (%p47_p3) }
  0x16   : > { %v313_v8 = vld [vmem:[%s1230_s12 + $0x100] sm:$0xff]  ;;  %310 = vst [vmem:[%s233_s13 + $0x30] sm:$0xff] %v309_v6  ;;  %312 = vst [vmem:[%s233_s13 + $0x38] sm:$0xff] %v311_v7  ;;  %v315_v9 = vld [vmem:[%s1230_s12 + $0x108] sm:$0xff] }
  0x17   : > { %314 = vst [vmem:[%s233_s13 + $0x40] sm:$0xff] %v313_v8  ;;  %v317_v10 = vld [vmem:[%s1230_s12 + $0x140] sm:$0xff]  ;;  %v319_v11 = vld [vmem:[%s1230_s12 + $0x148] sm:$0xff]  ;;  %316 = vst [vmem:[%s233_s13 + $0x48] sm:$0xff] %v315_v9 }
  0x18   : > { %318 = vst [vmem:[%s233_s13 + $0x50] sm:$0xff] %v317_v10  ;;  %320 = vst [vmem:[%s233_s13 + $0x58] sm:$0xff] %v319_v11  ;;  %v321_v12 = vld [vmem:[%s1230_s12 + $0x180] sm:$0xff]  ;;  %v323_v13 = vld [vmem:[%s1230_s12 + $0x188] sm:$0xff] }
  0x19   : > { %v325_v14 = vld [vmem:[%s1230_s12 + $0x1c0] sm:$0xff]  ;;  %322 = vst [vmem:[%s233_s13 + $0x60] sm:$0xff] %v321_v12  ;;  %324 = vst [vmem:[%s233_s13 + $0x68] sm:$0xff] %v323_v13  ;;  %v327_v15 = vld [vmem:[%s1230_s12 + $0x1c8] sm:$0xff] }
  0x1a   : > { %326 = vst [vmem:[%s233_s13 + $0x70] sm:$0xff] %v325_v14  ;;  %328 = vst [vmem:[%s233_s13 + $0x78] sm:$0xff] %v327_v15 }
  0x1b PF: > { %p930_p6 = scmp.ge.s32.totalorder %s1143_s25, 1  ;;  %p333_p7 = scmp.lt.s32.totalorder %s1143_s25, 5 }
  0x1d   : > { %p334_p8 = pnand %p930_p6, %p333_p7 }
  0x1e   : > { %s340_s14 = sand.u32 (!%p334_p8), 1, %s1127_s21   ;;  %p932_p9 = scmp.ne.s32.totalorder (!%p334_p8), %s1135_s23, 0 }
  0x1f   : > { %337 = sbr.rel (%p334_p8) target bundleno = 922 (0x39a), region = 78  ;;  %s931_s15 = sshll.u32 (!%p334_p8), %s340_s14, 7 }
  0x20   : > { %s1251_s16 = scalar_lea.vmem (!%p334_p8), [#allocation3], %s931_s15 }
  0x26   : > { %377 = sbr.rel (%p932_p9) target bundleno = 45 (0x2d), region = 86  ;;  %vm378_vm0 = vcmask (!%p932_p9), 261120   ;;  %v1145_v16 = vmov (!%p932_p9), 0.0  }
  0x27   : > { %379 = vst.msk [vmem:[#allocation2] sm:$0xff] (!%p932_p9), %vm378_vm0, %v1145_v16 }
  0x2d PF: > { %v1257_v17 = vld [vmem:[%s1486_s1] sm:$0xff]  ;;  %v1146_v18 = vmov 0   ;;  %v398_v19 = vlaneseq  ;;  %s933_s19 = sshll.u32 %s1135_s23, 4  ;;  %v1147_v26 = vmov 0.0   ;;  %v382_v45 = vld [vmem:[%s1251_s16 + $0x10] sm:$0xff]  ;;  %v381_v47 = vld [vmem:[%s1251_s16 + $0x8] sm:$0xff] }
  0x2e   : > { %1071 = vset.pattern.permute.xlu0 %v1146_v18  ;;  %v400_v21 = vstv %s933_s19  ;;  %v383_v46 = vld [vmem:[%s1251_s16 + $0x18] sm:$0xff]  ;;  %v380_v48 = vld [vmem:[%s1251_s16] sm:$0xff]  ;;  %v385_v54 = vld [vmem:[%s1251_s16 + $0x28] sm:$0xff]  ;;  %vm513_vm2 = vcmask 261120   ;;  %vm594_vm3 = vcmask 1041409   ;;  %vm596_vm4 = vcmask 1042434  }
  0x2f   : > { %403 = vperm.xlu0 %1071, %v1257_v17   ;;  %v399_v20 = vand.u32 127, %v398_v19  ;;  %v1261_v22 = vshrl.u32 %v398_v19, 7  ;;  %v384_v53 = vld [vmem:[%s1251_s16 + $0x20] sm:$0xff]  ;;  %v386_v63 = vld [vmem:[%s1251_s16 + $0x30] sm:$0xff]  ;;  %v387_v0 = vld [vmem:[%s1251_s16 + $0x38] sm:$0xff]  ;;  %vm598_vm5 = vcmask 1043459  }
  0x30   : > { %v388_v12 = vld [vmem:[%s1251_s16 + $0x40] sm:$0xff]  ;;  %v389_v13 = vld [vmem:[%s1251_s16 + $0x48] sm:$0xff]  ;;  %vm600_vm6 = vcmask 1044484   ;;  %vm602_vm7 = vcmask 1045509   ;;  %vm604_vm8 = vcmask 1046534   ;;  %vm606_vm9 = vcmask 1047559  }
  0x31   : > { %v401_v23 = vadd.s32 %v400_v21, %v399_v20  ;;  %v411_v24 = vsub.s32 0, %v1261_v22  ;;  %v422_v29 = vsub.s32 1, %v1261_v22  ;;  %v433_v31 = vsub.s32 2, %v1261_v22  ;;  %p935_p10 = scmp.ne.s32.totalorder %s1135_s23, 3 }
  0x32   : > { %v444_v33 = vsub.s32 3, %v1261_v22  ;;  %v455_v35 = vsub.s32 4, %v1261_v22  ;;  %v466_v37 = vsub.s32 5, %v1261_v22  ;;  %v477_v39 = vsub.s32 6, %v1261_v22 }
  0x33   : > { %v488_v41 = vsub.s32 7, %v1261_v22  ;;  %vm625_vm10 = vcmp.gt.s32.totalorder (!%p935_p10), %v1257_v17, 0  ;;  %vm838_vm11 = vcmask (!%p935_p10), 64512  }
  0xae   : > { %v404_v25 = vpop.permute.xlu0 %403 }
  0xaf   : > { %vm405_vm1 = vcmp.lt.s32.totalorder %v401_v23, %v404_v25 }
  0xb0   : > { %v934_v27 = vsel %vm405_vm1, 1.0, %v1147_v26 }
  0xb1   : > { %v412_v28 = vrot.slane %v934_v27, %v411_v24  ;;  %v423_v30 = vrot.slane %v934_v27, %v422_v29  ;;  %v434_v32 = vrot.slane %v934_v27, %v433_v31  ;;  %v445_v34 = vrot.slane %v934_v27, %v444_v33 }
  0xb2   : > { %v456_v36 = vrot.slane %v934_v27, %v455_v35  ;;  %v467_v38 = vrot.slane %v934_v27, %v466_v37  ;;  %v478_v40 = vrot.slane %v934_v27, %v477_v39  ;;  %v489_v42 = vrot.slane %v934_v27, %v488_v41 }
  0xb3   : > { %418 = vbcast.lane.b32.xlu1 %v412_v28, 264  ;;  %414 = vbcast.lane.b32.xlu0 %v412_v28, 256  ;;  %v390_v28 = vld [vmem:[%s1251_s16 + $0x50] sm:$0xff] }
  0xb7   : > { %425 = vbcast.lane.b32.xlu1 %v423_v30, 256  ;;  %429 = vbcast.lane.b32.xlu0 %v423_v30, 264  ;;  %v391_v30 = vld [vmem:[%s1251_s16 + $0x58] sm:$0xff] }
  0xbb   : > { %436 = vbcast.lane.b32.xlu1 %v434_v32, 256  ;;  %440 = vbcast.lane.b32.xlu0 %v434_v32, 264 }
  0xbf   : > { %447 = vbcast.lane.b32.xlu1 %v445_v34, 256  ;;  %451 = vbcast.lane.b32.xlu0 %v445_v34, 264 }
  0xc3   : > { %458 = vbcast.lane.b32.xlu1 %v456_v36, 256  ;;  %462 = vbcast.lane.b32.xlu0 %v456_v36, 264 }
  0xc7   : > { %469 = vbcast.lane.b32.xlu1 %v467_v38, 256  ;;  %473 = vbcast.lane.b32.xlu0 %v467_v38, 264 }
  0xcb   : > { %480 = vbcast.lane.b32.xlu1 %v478_v40, 256  ;;  %484 = vbcast.lane.b32.xlu0 %v478_v40, 264 }
  0xcf   : > { %491 = vbcast.lane.b32.xlu1 %v489_v42, 256  ;;  %495 = vbcast.lane.b32.xlu0 %v489_v42, 264 }
 0x125   : > { %v419_v43 = vpop.permute.xlu1 %418  ;;  %v415_v44 = vpop.permute.xlu0 %414 }
 0x126   : > { %v498_v55 = vmul.f32 %v419_v43, %v381_v47  ;;  %v497_v56 = vmul.f32 %v415_v44, %v380_v48  ;;  %v392_v43 = vld [vmem:[%s1251_s16 + $0x60] sm:$0xff]  ;;  %v393_v44 = vld [vmem:[%s1251_s16 + $0x68] sm:$0xff] }
 0x128   : > { %v515_v1 = vsel %vm513_vm2, %v498_v55, 0.0  ;;  %v514_v2 = vsel %vm513_vm2, %v497_v56, 0.0 }
 0x129   : > { %v426_v49 = vpop.permute.xlu1 %425  ;;  %v430_v50 = vpop.permute.xlu0 %429  ;;  %v516_v11 = vadd.f32 %v515_v1, %v514_v2 }
 0x12a   : > { %v499_v51 = vmul.f32 %v426_v49, %v382_v45  ;;  %v500_v52 = vmul.f32 %v430_v50, %v383_v46 }
 0x12b   : > { %v517_v26 = vrot.slane %v516_v11, 4 }
 0x12c   : > { %v523_v59 = vsel %vm513_vm2, %v499_v51, 0.0  ;;  %v524_v60 = vsel %vm513_vm2, %v500_v52, 0.0 }
 0x12d   : > { %v437_v57 = vpop.permute.xlu1 %436  ;;  %v441_v58 = vpop.permute.xlu0 %440  ;;  %v525_v5 = vadd.f32 %v524_v60, %v523_v59  ;;  %v518_v40 = vadd.f32 %v517_v26, %v516_v11  ;;  %v395_v59 = vld [vmem:[%s1251_s16 + $0x78] sm:$0xff] }
 0x12e   : > { %v501_v61 = vmul.f32 %v437_v57, %v384_v53  ;;  %v502_v62 = vmul.f32 %v441_v58, %v385_v54  ;;  %v394_v58 = vld [vmem:[%s1251_s16 + $0x70] sm:$0xff] }
 0x12f   : > { %v526_v16 = vrot.slane %v525_v5, 4  ;;  %v519_v55 = vrot.slane %v518_v40, 2 }
 0x130   : > { %v532_v3 = vsel %vm513_vm2, %v501_v61, 0.0  ;;  %v533_v4 = vsel %vm513_vm2, %v502_v62, 0.0 }
 0x131   : > { %v448_v6 = vpop.permute.xlu1 %447  ;;  %v452_v7 = vpop.permute.xlu0 %451  ;;  %v534_v8 = vadd.f32 %v533_v4, %v532_v3  ;;  %v527_v33 = vadd.f32 %v526_v16, %v525_v5 }
 0x132   : > { %v503_v9 = vmul.f32 %v448_v6, %v386_v63  ;;  %v504_v10 = vmul.f32 %v452_v7, %v387_v0  ;;  %v520_v7 = vadd.f32 %v519_v55, %v518_v40 }
 0x133   : > { %v535_v21 = vrot.slane %v534_v8, 4  ;;  %v528_v47 = vrot.slane %v527_v33, 2 }
 0x134   : > { %v541_v14 = vsel %vm513_vm2, %v503_v9, 0.0  ;;  %v542_v15 = vsel %vm513_vm2, %v504_v10, 0.0 }
 0x135   : > { %v543_v18 = vadd.f32 %v542_v15, %v541_v14  ;;  %v459_v19 = vpop.permute.xlu1 %458  ;;  %v463_v20 = vpop.permute.xlu0 %462  ;;  %v536_v37 = vadd.f32 %v535_v21, %v534_v8  ;;  %v529_v63 = vadd.f32 %v528_v47, %v527_v33  ;;  %v408_v47 = vld [vmem:[#allocation2] sm:$0xff] }
 0x136   : > { %v505_v23 = vmul.f32 %v459_v19, %v388_v12  ;;  %v506_v25 = vmul.f32 %v463_v20, %v389_v13  ;;  %v521_v20 = vrot.slane %v520_v7, 1 }
 0x137   : > { %v544_v27 = vrot.slane %v543_v18, 4  ;;  %v537_v52 = vrot.slane %v536_v37, 2  ;;  %v530_v14 = vrot.slane %v529_v63, 1 }
 0x138   : > { %v550_v31 = vsel %vm513_vm2, %v505_v23, 0.0  ;;  %v551_v32 = vsel %vm513_vm2, %v506_v25, 0.0  ;;  %v522_v33 = vadd.f32 %v521_v20, %v520_v7  ;;  %v733_v20 = vld [vmem:[%s1489_s4 + $0x20] sm:$0xff] (!%p935_p10) }
 0x139   : > { %v552_v34 = vadd.f32 %v551_v32, %v550_v31  ;;  %v470_v35 = vpop.permute.xlu1 %469  ;;  %v474_v36 = vpop.permute.xlu0 %473  ;;  %v545_v41 = vadd.f32 %v544_v27, %v543_v18  ;;  %v538_v4 = vadd.f32 %v537_v52, %v536_v37  ;;  %v531_v27 = vadd.f32 %v530_v14, %v529_v63  ;;  %v635_v63 = vld [vmem:[%s1487_s2 + $0x38] sm:$0xff] (!%p935_p10) }
 0x13a   : > { %v507_v38 = vmul.f32 %v470_v35, %v390_v28  ;;  %v508_v39 = vmul.f32 %v474_v36, %v391_v30  ;;  %v615_v52 = vcvt.s32.f32 (!%p935_p10), %v1257_v17  ;;  %v732_v14 = vld [vmem:[%s1489_s4 + $0x18] sm:$0xff] (!%p935_p10) }
 0x13b   : > { %v553_v42 = vrot.slane %v552_v34, 4  ;;  %v546_v56 = vrot.slane %v545_v41, 2  ;;  %v539_v19 = vrot.slane %v538_v4, 1 }
 0x13c   : > { %v559_v45 = vsel %vm513_vm2, %v507_v38, 0.0  ;;  %v560_v46 = vsel %vm513_vm2, %v508_v39, 0.0  ;;  %v595_v38 = vsel %vm594_vm3, %v531_v27, %v522_v33  ;;  %v617_v55 = vmax.f32 (!%p935_p10), %v615_v52, 1.0 }
 0x13d   : > { %v554_v48 = vadd.f32 %v553_v42, %v552_v34  ;;  %v561_v49 = vadd.f32 %v560_v46, %v559_v45  ;;  %v481_v50 = vpop.permute.xlu1 %480  ;;  %v485_v51 = vpop.permute.xlu0 %484  ;;  %v547_v8 = vadd.f32 %v546_v56, %v545_v41  ;;  %v540_v32 = vadd.f32 %v539_v19, %v538_v4  ;;  %v745_v4 = vld [vmem:[%s1489_s4 + $0x80] sm:$0xff] (!%p935_p10) }
 0x13e   : > { %v509_v53 = vmul.f32 %v481_v50, %v392_v43  ;;  %v510_v54 = vmul.f32 %v485_v51, %v393_v44 }
 0x13f   : > { %v562_v57 = vrot.slane %v561_v49, 4  ;;  %v555_v60 = vrot.slane %v554_v48, 2  ;;  %v548_v21 = vrot.slane %v547_v8, 1  ;;  %v597_v41 = vsel %vm596_vm4, %v540_v32, %v595_v38  ;;  %v754_v32 = vld [vmem:[%s1489_s4 + $0xc8] sm:$0xff] (!%p935_p10)  ;;  %v756_v38 = vld [vmem:[%s1489_s4 + $0xd8] sm:$0xff] (!%p935_p10) }
 0x140   : > { %v568_v61 = vsel %vm513_vm2, %v509_v53, 0.0  ;;  %v569_v62 = vsel %vm513_vm2, %v510_v54, 0.0  ;;  %v1148_v53 = vmov (!%p935_p10), 0   ;;  %v1149_v54 = vmov (!%p935_p10), 0.0  }
 0x141   : > { %v563_v0 = vadd.f32 %v562_v57, %v561_v49  ;;  %v570_v1 = vadd.f32 %v569_v62, %v568_v61  ;;  %v492_v2 = vpop.permute.xlu1 %491  ;;  %v496_v3 = vpop.permute.xlu0 %495  ;;  %v556_v11 = vadd.f32 %v555_v60, %v554_v48  ;;  %v549_v34 = vadd.f32 %v548_v21, %v547_v8  ;;  %1072 = vset.pattern.permute.xlu0 (!%p935_p10), %v1148_v53  ;;  %v629_v57 = vld [vmem:[%s1487_s2 + $0x8] sm:$0xff] (!%p935_p10)  ;;  %v628_v60 = vld [vmem:[%s1487_s2] sm:$0xff] (!%p935_p10)  ;;  %v630_v61 = vld [vmem:[%s1487_s2 + $0x10] sm:$0xff] (!%p935_p10) }
 0x142   : > { %v511_v5 = vmul.f32 %v492_v2, %v394_v58  ;;  %v512_v6 = vmul.f32 %v496_v3, %v395_v59  ;;  %722 = vmatprep.mubr.f32.mxu0 (!%p935_p10), %v1149_v54  ;;  %620 = vperm.xlu0 (!%p935_p10), %1072, %v617_v55   ;;  %v936_v56 = vsel (!%p935_p10), %vm625_vm10, 1.0, %v1149_v54  ;;  %v631_v58 = vld [vmem:[%s1487_s2 + $0x18] sm:$0xff] (!%p935_p10)  ;;  %v981_v17 = vpack.c.bf16 (!%p935_p10), %v630_v61, %v628_v60  ;;  %v633_v62 = vld [vmem:[%s1487_s2 + $0x28] sm:$0xff] (!%p935_p10)  ;;  %v634_v2 = vld [vmem:[%s1487_s2 + $0x30] sm:$0xff] (!%p935_p10) }
 0x143   : > { %v564_v9 = vrot.slane %v563_v0, 2  ;;  %v571_v10 = vrot.slane %v570_v1, 4  ;;  %v557_v26 = vrot.slane %v556_v11, 1  ;;  %v599_v43 = vsel %vm598_vm5, %v549_v34, %v597_v41  ;;  %v730_v8 = vld [vmem:[%s1489_s4 + $0x8] sm:$0xff] (!%p935_p10)  ;;  %v739_v41 = vld [vmem:[%s1489_s4 + $0x50] sm:$0xff] (!%p935_p10)  ;;  %v760_v55 = vld [vmem:[%s1489_s4 + $0xf8] sm:$0xff] (!%p935_p10) }
 0x144   : > { %v577_v12 = vsel %vm513_vm2, %v511_v5, 0.0  ;;  %v578_v13 = vsel %vm513_vm2, %v512_v6, 0.0  ;;  %v979_v59 = vpack.c.bf16 (!%p935_p10), %v631_v58, %v629_v57  ;;  %v746_v5 = vld [vmem:[%s1489_s4 + $0x88] sm:$0xff] (!%p935_p10)  ;;  %v729_v6 = vld [vmem:[%s1489_s4] sm:$0xff] (!%p935_p10)  ;;  %v759_v54 = vld [vmem:[%s1489_s4 + $0xf0] sm:$0xff] (!%p935_p10) }
 0x145   : > { %v565_v15 = vadd.f32 %v564_v9, %v563_v0  ;;  %v572_v16 = vadd.f32 %v571_v10, %v570_v1  ;;  %v579_v18 = vadd.f32 %v578_v13, %v577_v12  ;;  %v558_v37 = vadd.f32 %v557_v26, %v556_v11  ;;  %v632_v0 = vld [vmem:[%s1487_s2 + $0x20] sm:$0xff] (!%p935_p10)  ;;  %v747_v9 = vld [vmem:[%s1489_s4 + $0x90] sm:$0xff] (!%p935_p10)  ;;  %v748_v10 = vld [vmem:[%s1489_s4 + $0x98] sm:$0xff] (!%p935_p10) }
 0x146   : > { %650 = vperm.xlu0 (!%p935_p10), %1072, %v936_v56   ;;  %980 = vmatprep.subr.bf16.mxu0 (!%p935_p10), %v979_v59  ;;  %v983_v1 = vpack.c.bf16 (!%p935_p10), %v635_v63, %v633_v62  ;;  %v985_v3 = vpack.c.bf16 (!%p935_p10), %v634_v2, %v632_v0  ;;  %v987_v7 = vpack.c.bf16 (!%p935_p10), %v746_v5, %v745_v4  ;;  %v731_v13 = vld [vmem:[%s1489_s4 + $0x10] sm:$0xff] (!%p935_p10)  ;;  %v734_v21 = vld [vmem:[%s1489_s4 + $0x28] sm:$0xff] (!%p935_p10)  ;;  %v744_v58 = vld [vmem:[%s1489_s4 + $0x78] sm:$0xff] (!%p935_p10) }
 0x147   : > { %v573_v23 = vrot.slane %v572_v16, 2  ;;  %v580_v25 = vrot.slane %v579_v18, 4  ;;  %v566_v28 = vrot.slane %v565_v15, 1  ;;  %v601_v45 = vsel %vm600_vm6, %v558_v37, %v599_v43  ;;  %982 = vmatpush1.bf16.msra.mxu0 (!%p935_p10), %v981_v17  ;;  %v755_v37 = vld [vmem:[%s1489_s4 + $0xd0] sm:$0xff] (!%p935_p10)  ;;  %v757_v43 = vld [vmem:[%s1489_s4 + $0xe0] sm:$0xff] (!%p935_p10) }
 0x148   : > { %984 = vmatprep.subr.bf16.mxu0 (!%p935_p10), %v983_v1  ;;  %v989_v11 = vpack.c.bf16 (!%p935_p10), %v730_v8, %v729_v6  ;;  %v991_v12 = vpack.c.bf16 (!%p935_p10), %v748_v10, %v747_v9  ;;  %988 = vmatprep.subr.bf16.mxu1 (!%p935_p10), %v987_v7  ;;  %v997_v26 = vpack.c.bf16 (!%p935_p10), %v734_v21, %v733_v20  ;;  %v743_v57 = vld [vmem:[%s1489_s4 + $0x70] sm:$0xff] (!%p935_p10)  ;;  %v636_v60 = vld [vmem:[%s1488_s3] sm:$0x3] (!%p935_p10) }
 0x149   : > { %v574_v30 = vadd.f32 %v573_v23, %v572_v16  ;;  %v581_v31 = vadd.f32 %v580_v25, %v579_v18  ;;  %v567_v39 = vadd.f32 %v566_v28, %v565_v15  ;;  %v749_v15 = vld [vmem:[%s1489_s4 + $0xa0] sm:$0xff] (!%p935_p10)  ;;  %v750_v16 = vld [vmem:[%s1489_s4 + $0xa8] sm:$0xff] (!%p935_p10)  ;;  %v993_v18 = vpack.c.bf16 (!%p935_p10), %v732_v14, %v731_v13  ;;  %v751_v23 = vld [vmem:[%s1489_s4 + $0xb0] sm:$0xff] (!%p935_p10) }
 0x14a   : > { %990 = vmatpush3.bf16.msra.mxu1 (!%p935_p10), %v989_v11  ;;  %v995_v19 = vpack.c.bf16 (!%p935_p10), %v750_v16, %v749_v15  ;;  %v752_v25 = vld [vmem:[%s1489_s4 + $0xb8] sm:$0xff] (!%p935_p10)  ;;  %v735_v28 = vld [vmem:[%s1489_s4 + $0x30] sm:$0xff] (!%p935_p10)  ;;  %v1015_v56 = vpack.c.bf16 (!%p935_p10), %v760_v55, %v759_v54  ;;  %v1017_v59 = vpack.c.bf16 (!%p935_p10), %v744_v58, %v743_v57  ;;  %v645_v61 = vrot.slane (!%p935_p10), %v636_v60, %v422_v29  ;;  %v938_v6 = vld [vmem:[%s1490_s5] ss:$0 sm:$0xff] (!%p935_p10) }
 0x14b   : > { %v575_v35 = vrot.slane %v574_v30, 1  ;;  %v582_v36 = vrot.slane %v581_v31, 2  ;;  %v603_v46 = vsel %vm602_vm7, %v567_v39, %v601_v45  ;;  %986 = vmatpush1.bf16.msra.mxu0 (!%p935_p10), %v985_v3  ;;  %992 = vmatprep.subr.bf16.mxu1 (!%p935_p10), %v991_v12  ;;  %v999_v27 = vpack.c.bf16 (!%p935_p10), %v752_v25, %v751_v23 }
 0x14c   : > { %v641_v17 = vrot.slane (!%p935_p10), %v636_v60, %v411_v24 }
 0x14d   : > { %v583_v40 = vadd.f32 %v582_v36, %v581_v31  ;;  %v576_v42 = vadd.f32 %v575_v35, %v574_v30  ;;  %v736_v30 = vld [vmem:[%s1489_s4 + $0x38] sm:$0xff] (!%p935_p10)  ;;  %v753_v31 = vld [vmem:[%s1489_s4 + $0xc0] sm:$0xff] (!%p935_p10)  ;;  %v738_v36 = vld [vmem:[%s1489_s4 + $0x48] sm:$0xff] (!%p935_p10) }
 0x14e   : > { %994 = vmatpush3.bf16.msra.mxu1 (!%p935_p10), %v993_v18  ;;  %v1001_v33 = vpack.c.bf16 (!%p935_p10), %v736_v30, %v735_v28  ;;  %v1003_v34 = vpack.c.bf16 (!%p935_p10), %v754_v32, %v753_v31  ;;  %v737_v35 = vld [vmem:[%s1489_s4 + $0x40] sm:$0xff] (!%p935_p10) }
 0x14f   : > { %v584_v44 = vrot.slane %v583_v40, 1  ;;  %v605_v49 = vsel %vm604_vm8, %v576_v42, %v603_v46  ;;  %996 = vmatprep.subr.bf16.mxu1 (!%p935_p10), %v995_v19  ;;  %v1005_v39 = vpack.c.bf16 (!%p935_p10), %v738_v36, %v737_v35  ;;  %v740_v42 = vld [vmem:[%s1489_s4 + $0x58] sm:$0xff] (!%p935_p10) }
 0x150   : > { %614 = sbr.rel (%p935_p10) target bundleno = 897 (0x381), region = 90  ;;  %v1009_v45 = vpack.c.bf16 (!%p935_p10), %v740_v42, %v739_v41 }
 0x151   : > { %v585_v48 = vadd.f32 %v584_v44, %v583_v40  ;;  %v1007_v40 = vpack.c.bf16 (!%p935_p10), %v756_v38, %v755_v37  ;;  %v758_v44 = vld [vmem:[%s1489_s4 + $0xe8] sm:$0xff] (!%p935_p10) }
 0x152   : > { %998 = vmatpush3.bf16.msra.mxu1 (!%p935_p10), %v997_v26  ;;  %v1011_v46 = vpack.c.bf16 (!%p935_p10), %v758_v44, %v757_v43 }
 0x153   : > { %v607_v50 = vsel %vm606_vm9, %v585_v48, %v605_v49  ;;  %1000 = vmatprep.subr.bf16.mxu1 (!%p935_p10), %v999_v27  ;;  %v742_v48 = vld [vmem:[%s1489_s4 + $0x68] sm:$0xff] (!%p935_p10) }
 0x154   : > { %v609_v51 = vadd.f32 %v607_v50, %v408_v47  ;;  %v741_v47 = vld [vmem:[%s1489_s4 + $0x60] sm:$0xff] (!%p935_p10) }
 0x155   : > { %v1013_v49 = vpack.c.bf16 (!%p935_p10), %v742_v48, %v741_v47 }
 0x156   : > { %610 = vst.msk [vmem:[#allocation2] sm:$0xff] %vm513_vm2, %v609_v51  ;;  %1002 = vmatpush3.bf16.msra.mxu1 (!%p935_p10), %v1001_v33 }
 0x157   : > { %1004 = vmatprep.subr.bf16.mxu1 %v1003_v34 }
 0x15a   : > { %1006 = vmatpush3.bf16.msra.mxu1 %v1005_v39 }
 0x15b   : > { %1008 = vmatprep.subr.bf16.mxu1 %v1007_v40 }
 0x15d   : > { %v616_v51 = vld [vmem:[#allocation2] sm:$0xff] }
 0x15e   : > { %1010 = vmatpush3.bf16.msra.mxu1 %v1009_v45 }
 0x15f   : > { %1012 = vmatprep.subr.bf16.mxu1 %v1011_v46 }
 0x162   : > { %1014 = vmatpush3.bf16.msra.mxu1 %v1013_v49 }
 0x163   : > { %1016 = vmatprep.subr.bf16.mxu1 %v1015_v56 }
 0x166   : > { %1018 = vmatpush3.bf16.msra.mxu1 %v1017_v59 }
 0x1c1   : > { %v621_v50 = vpop.permute.xlu0 %620 }
 0x1c2   : > { %1073 = vrcp.f32 %v621_v50 }
 0x1c5   : > { %v651_v62 = vpop.permute.xlu0 %650 }
 0x1c6   : > { %v654_v63 = vmul.f32 %v651_v62, %v645_v61  ;;  %v653_v1 = vmul.f32 %v651_v62, %v641_v17 }
 0x1cc   : > { %v1074_v52 = vpop.eup %1073 }
 0x1cd   : > { %v624_v53 = vmul.f32 %v1074_v52, %v616_v51 }
 0x1cf   : > { %937 = vmatmul.mubr.msk.f32.vlgmr.msra.gmra.mrb[0].mxu0 %vm513_vm2, %v624_v53 }
 0x2a2   : > { %v724_v0 = vpop.f32.mrb[0].mxu0 }
 0x2a3   : > { %v726_v2 = vpop.f32.mrb[1].mxu0  ;;  %v725_v4 = vadd.f32 %v724_v0, %v653_v1 }
 0x2a4   : > { %v727_v3 = vadd.f32 %v726_v2, %v654_v63 }
 0x2a6   : > { %832 = vmatprep.mubr.f32.mxu1 %v727_v3 }
 0x2a7   : > { %833 = vmatmul.mubr.f32.vlgmr.msra.gmra.mrb[0].mxu1 %v725_v4 }
 0x37a   : > { %v976_v5 = vpop.f32.mrb[0].mxu1 }
 0x37b   : > { %v977_v7 = vpop.f32.mrb[1].mxu1 }
 0x37c   : > { %v978_v8 = vadd.f32 %v977_v7, %v976_v5 }
 0x37e   : > { %v835_v29 = vadd.f32 %v978_v8, %v938_v6 }
 0x380   : > { %839 = vst.msk [vmem:[#allocation4] sm:$0xff] %vm838_vm11, %v835_v29 }
 0x381 PF: > { %p1444_p11 = scmp.eq.s32.totalorder %s923_s26, 3  ;;  %s1150_s15 = smov [#allocation4]  }
 0x382   : > { %s849_s16 = sshll.u32 %s1150_s15, 4  ;;  %s850_s16 = int_to_ptr.vmem [resolvable:$true] %s849_s16 }
 0x383   : > { %s1075_s17 = scalar_lea.vmem %s850_s16, 128  ;;  %p1082_p1 = scmp.lt.s32.totalorder %s850_s16, %s850_s16 }
 0x384   : > { %p1076_p12 = scmp.ne.s32.totalorder %s850_s16, %s1075_s17  ;;  %p1083_p2 = scmp.lt.s32.totalorder %s1075_s17, %s1075_s17 }
 0x386   : > { %p1077_p13 = pnand %p1076_p12, %p1444_p11  ;;  %p1084_p3 = por %p1083_p2, %p1082_p1 }
 0x388   : > { %p1078_p0 = pneg %p1077_p13 }
 0x38a   : > { %p1085_p4 = pnand %p1084_p3, %p1078_p0 }
 0x38c   : > { %1088 = shalt.err (!%p1085_p4)
}
 0x38d   : > { %s1089_s26 = scalar_lea.hbm %s1491_s6, 128 }
 0x38e   : > { %p1090_p5 = scmp.ne.s32.totalorder %s1491_s6, %s1089_s26  ;;  %p1095_p8 = scmp.lt.u32.totalorder %s1089_s26, %s1491_s6 }
 0x390   : > { %p1091_p6 = pnand %p1090_p5, %p1444_p11 }
 0x392   : > { %p1092_p7 = pneg %p1091_p6 }
 0x394   : > { %p1097_p9 = pnand %p1095_p8, %p1092_p7 }
 0x396   : > { %1100 = shalt.err (!%p1097_p9)
}
 0x397   : > { %1020 = dma.vmem_to_hbm [thread:$0]  (%p1444_p11), %s850_s16, 128, %s1491_s6, [#allocation5]  }
 0x398   : > { %1122 = dma.done.wait (%p1444_p11), [#allocation5], 128  }
 0x399   : > { %1124 = vsyncadd (%p1444_p11), [#allocation5], 4294967168 }
 0x39a PF: > { %s17_s25 = sadd.s32 1, %s1143_s25   ;;  %s1493_s21 = smov %s1131_s22 }
 0x39b   : > { %p14_p10 = scmp.ge.s32.totalorder %s17_s25, 6   ;;  %s1494_s22 = smov %s1222_s30 }
 0x39c   : > { %s1495_s23 = smov %s1139_s24  ;;  %s1496_s24 = smov %s1498_s27 }
 0x39d   :  { %16 = sbr.rel (!%p14_p10) target bundleno = 3 (0x3), region = 126 }
 0x3a4   :  { %862 = vsyncpa [#allocation5], 1 }
 0x3a5   :  { %864 = vsyncpa [#allocation5 + $0x1], 1 }

</bundles_post_ra>
